<compile_context>
chip_gen: v5e
topology: v5e:2x2
jax: 0.10.0
libtpu: 0.0.40
codegen_flags: <defaults>
</compile_context>

<pallas_src>
import functools

import jax
import jax.numpy as jnp
from jax.experimental import pallas as pl
from jax.experimental.pallas import tpu as pltpu

INPUT_DIM = 2
HIDDEN_DIM = 512
OUTPUT_DIM = 1

MAX_TB = 256  # max batch tile (rows); fills the MXU on v5e/v6e/v7x


def _round_up(n, m):
    return ((n + m - 1) // m) * m


def _mlp_kernel(x_ref, w1_ref, b1_ref, w2_ref, b2_ref, w3_ref, b3_ref, o_ref):
    x = x_ref[...]  # (TB, 2)

    # Layer 1 on the VPU: K=2, so two broadcast FMAs instead of an MXU matmul.
    h1 = (x[:, 0:1] * w1_ref[0:1, :]
          + x[:, 1:2] * w1_ref[1:2, :]
          + b1_ref[...])
    h1 = jnp.maximum(h1, 0.0)

    # Layer 2 on the MXU: [TB, 512] @ [512, 512].
    h2 = jnp.dot(h1, w2_ref[...], preferred_element_type=jnp.float32)
    h2 = jnp.maximum(h2 + b2_ref[...], 0.0)

    # Layer 3: [TB, 512] @ [512, 1] -> sigmoid on the single real logit column.
    logits = jnp.dot(h2, w3_ref[...], preferred_element_type=jnp.float32)
    o_ref[...] = jax.nn.sigmoid(logits + b3_ref[...])


@jax.jit
def discriminator_forward(x, w1, b1, w2, b2, w3, b3):
    """x: [B, 2] f32. w1:[2,512], w2:[512,512], w3:[512,1]; b*: (1, out).

    Returns [B, 1] f32 = sigmoid(relu(relu(x@w1+b1)@w2+b2)@w3+b3).
    """
    B = x.shape[0]
    # Batch tile: up to MAX_TB rows, sublane-aligned; grid covers ceil(B/TB).
    TB = min(MAX_TB, _round_up(max(B, 8), 8))
    Bp = _round_up(B, TB)
    if Bp != B:
        x = jnp.pad(x, ((0, Bp - B), (0, 0)))

    grid = (Bp // TB,)
    out = pl.pallas_call(
        _mlp_kernel,
        out_shape=jax.ShapeDtypeStruct((Bp, OUTPUT_DIM), jnp.float32),
        grid_spec=pltpu.PrefetchScalarGridSpec(
            num_scalar_prefetch=0,
            grid=grid,
            in_specs=[
                pl.BlockSpec((TB, INPUT_DIM), lambda i: (i, 0)),            # x
                pl.BlockSpec((INPUT_DIM, HIDDEN_DIM), lambda i: (0, 0)),    # w1
                pl.BlockSpec((1, HIDDEN_DIM), lambda i: (0, 0)),            # b1
                pl.BlockSpec((HIDDEN_DIM, HIDDEN_DIM), lambda i: (0, 0)),   # w2
                pl.BlockSpec((1, HIDDEN_DIM), lambda i: (0, 0)),            # b2
                pl.BlockSpec((HIDDEN_DIM, OUTPUT_DIM), lambda i: (0, 0)),   # w3
                pl.BlockSpec((1, OUTPUT_DIM), lambda i: (0, 0)),            # b3
            ],
            out_specs=pl.BlockSpec((TB, OUTPUT_DIM), lambda i: (i, 0)),
        ),
        compiler_params=pltpu.CompilerParams(
            dimension_semantics=("parallel",)),
    )(x, w1, b1, w2, b2, w3, b3)

    if Bp != B:
        out = out[:B]
    return out


def init_params(key):
    """Matches the PyTorch init: weights ~ N(0, 0.01), biases = 0.

    Weights are stored [in, out] (transpose of nn.Linear's [out, in]); biases
    are stored pre-shaped (1, out) so the forward does no per-call relayout.
    """
    k1, k2, k3 = jax.random.split(key, 3)
    w1 = 0.01 * jax.random.normal(k1, (INPUT_DIM, HIDDEN_DIM), jnp.float32)
    b1 = jnp.zeros((1, HIDDEN_DIM), jnp.float32)
    w2 = 0.01 * jax.random.normal(k2, (HIDDEN_DIM, HIDDEN_DIM), jnp.float32)
    b2 = jnp.zeros((1, HIDDEN_DIM), jnp.float32)
    w3 = 0.01 * jax.random.normal(k3, (HIDDEN_DIM, OUTPUT_DIM), jnp.float32)
    b3 = jnp.zeros((1, OUTPUT_DIM), jnp.float32)
    return w1, b1, w2, b2, w3, b3


def _reference(x, w1, b1, w2, b2, w3, b3):
    h = jnp.maximum(x @ w1 + b1, 0.0)
    h = jnp.maximum(h @ w2 + b2, 0.0)
    return jax.nn.sigmoid(h @ w3 + b3)


if __name__ == "__main__":
    key = jax.random.PRNGKey(0)
    kx, kp = jax.random.split(key)
    B = 16
    x = jax.random.normal(kx, (B, INPUT_DIM), jnp.float32)
    params = init_params(kp)

    y = discriminator_forward(x, *params)
    jax.block_until_ready(y)

    y_ref = _reference(x, *params)
    assert y.shape == (B, OUTPUT_DIM)
    assert jnp.allclose(y, y_ref, atol=1e-5, rtol=1e-5)
    print("KERNEL_OK")
</pallas_src>

<mosaic_0001>
module attributes {stable_mosaic.version = 11 : i64} {
  func.func @_mlp_kernel(%arg0: i32, %arg1: memref<16x2xf32, #tpu.memory_space<vmem>>, %arg2: memref<2x512xf32, #tpu.memory_space<vmem>>, %arg3: memref<1x512xf32, #tpu.memory_space<vmem>>, %arg4: memref<512x512xf32, #tpu.memory_space<vmem>>, %arg5: memref<1x512xf32, #tpu.memory_space<vmem>>, %arg6: memref<512x1xf32, #tpu.memory_space<vmem>>, %arg7: memref<1x1xf32, #tpu.memory_space<vmem>>, %arg8: memref<16x1xf32, #tpu.memory_space<vmem>>) attributes {dimension_semantics = [#tpu.dimension_semantics<parallel>], iteration_bounds = array<i64: 1>, scalar_prefetch = 0 : i64, scratch_operands = 0 : i64, tpu.core_type = #tpu.core_type<tc>, window_params = [{transform_indices = @transform_0, window_bounds = array<i64: 16, 2>}, {pipeline_mode = #tpu.pipeline_mode<synchronous>, transform_indices = @transform_1, window_bounds = array<i64: 2, 512>}, {pipeline_mode = #tpu.pipeline_mode<synchronous>, transform_indices = @transform_2, window_bounds = array<i64: 1, 512>}, {pipeline_mode = #tpu.pipeline_mode<synchronous>, transform_indices = @transform_3, window_bounds = array<i64: 512, 512>}, {pipeline_mode = #tpu.pipeline_mode<synchronous>, transform_indices = @transform_4, window_bounds = array<i64: 1, 512>}, {pipeline_mode = #tpu.pipeline_mode<synchronous>, transform_indices = @transform_5, window_bounds = array<i64: 512, 1>}, {pipeline_mode = #tpu.pipeline_mode<synchronous>, transform_indices = @transform_6, window_bounds = array<i64: 1, 1>}, {transform_indices = @transform_7, window_bounds = array<i64: 16, 1>}]} {
    %c0 = arith.constant 0 : index
    %c0_0 = arith.constant 0 : index
    %0 = vector.load %arg1[%c0, %c0_0] : memref<16x2xf32, #tpu.memory_space<vmem>>, vector<16x2xf32>
    %1 = vector.extract_strided_slice %0 {offsets = [0, 0], sizes = [16, 1], strides = [1, 1]} : vector<16x2xf32> to vector<16x1xf32>
    %c0_1 = arith.constant 0 : index
    %c0_2 = arith.constant 0 : index
    %2 = vector.load %arg2[%c0_1, %c0_2] : memref<2x512xf32, #tpu.memory_space<vmem>>, vector<1x512xf32>
    %3 = vector.broadcast %1 : vector<16x1xf32> to vector<16x512xf32>
    %4 = vector.broadcast %2 : vector<1x512xf32> to vector<16x512xf32>
    %5 = arith.mulf %3, %4 : vector<16x512xf32>
    %6 = vector.extract_strided_slice %0 {offsets = [0, 1], sizes = [16, 1], strides = [1, 1]} : vector<16x2xf32> to vector<16x1xf32>
    %c1 = arith.constant 1 : index
    %c0_3 = arith.constant 0 : index
    %7 = vector.load %arg2[%c1, %c0_3] : memref<2x512xf32, #tpu.memory_space<vmem>>, vector<1x512xf32>
    %8 = vector.broadcast %6 : vector<16x1xf32> to vector<16x512xf32>
    %9 = vector.broadcast %7 : vector<1x512xf32> to vector<16x512xf32>
    %10 = arith.mulf %8, %9 : vector<16x512xf32>
    %11 = arith.addf %5, %10 : vector<16x512xf32>
    %c0_4 = arith.constant 0 : index
    %c0_5 = arith.constant 0 : index
    %12 = vector.load %arg3[%c0_4, %c0_5] : memref<1x512xf32, #tpu.memory_space<vmem>>, vector<1x512xf32>
    %13 = vector.broadcast %12 : vector<1x512xf32> to vector<16x512xf32>
    %14 = arith.addf %11, %13 : vector<16x512xf32>
    %cst = arith.constant 0.000000e+00 : f32
    %15 = vector.broadcast %cst : f32 to vector<16x512xf32>
    %16 = arith.maximumf %14, %15 : vector<16x512xf32>
    %c0_6 = arith.constant 0 : index
    %c0_7 = arith.constant 0 : index
    %17 = vector.load %arg4[%c0_6, %c0_7] : memref<512x512xf32, #tpu.memory_space<vmem>>, vector<512x512xf32>
    %cst_8 = arith.constant dense<0.000000e+00> : vector<16x512xf32>
    %18 = tpu.matmul %16, %17, %cst_8 {dimension_numbers = #tpu.dot_dimension_numbers<[1], [0], [0], [1], [0, 0, 1, 1], [], []>} : vector<16x512xf32>, vector<512x512xf32>, vector<16x512xf32> -> vector<16x512xf32>
    %c0_9 = arith.constant 0 : index
    %c0_10 = arith.constant 0 : index
    %19 = vector.load %arg5[%c0_9, %c0_10] : memref<1x512xf32, #tpu.memory_space<vmem>>, vector<1x512xf32>
    %20 = vector.broadcast %19 : vector<1x512xf32> to vector<16x512xf32>
    %21 = arith.addf %18, %20 : vector<16x512xf32>
    %cst_11 = arith.constant 0.000000e+00 : f32
    %22 = vector.broadcast %cst_11 : f32 to vector<16x512xf32>
    %23 = arith.maximumf %21, %22 : vector<16x512xf32>
    %c0_12 = arith.constant 0 : index
    %c0_13 = arith.constant 0 : index
    %24 = vector.load %arg6[%c0_12, %c0_13] : memref<512x1xf32, #tpu.memory_space<vmem>>, vector<512x1xf32>
    %cst_14 = arith.constant dense<0.000000e+00> : vector<16x1xf32>
    %25 = tpu.matmul %23, %24, %cst_14 {dimension_numbers = #tpu.dot_dimension_numbers<[1], [0], [0], [1], [0, 0, 1, 1], [], []>} : vector<16x512xf32>, vector<512x1xf32>, vector<16x1xf32> -> vector<16x1xf32>
    %c0_15 = arith.constant 0 : index
    %c0_16 = arith.constant 0 : index
    %26 = vector.load %arg7[%c0_15, %c0_16] : memref<1x1xf32, #tpu.memory_space<vmem>>, vector<1x1xf32>
    %27 = vector.broadcast %26 : vector<1x1xf32> to vector<16x1xf32>
    %28 = arith.addf %25, %27 : vector<16x1xf32>
    %29 = arith.negf %28 : vector<16x1xf32>
    %30 = math.exp %29 : vector<16x1xf32>
    %cst_17 = arith.constant 1.000000e+00 : f32
    %31 = vector.broadcast %cst_17 : f32 to vector<16x1xf32>
    %32 = arith.addf %31, %30 : vector<16x1xf32>
    %33 = arith.divf %31, %32 : vector<16x1xf32>
    %c0_18 = arith.constant 0 : index
    %c0_19 = arith.constant 0 : index
    %34 = vector.load %arg8[%c0_18, %c0_19] : memref<16x1xf32, #tpu.memory_space<vmem>>, vector<16x1xf32>
    tpu.vector_store %arg8[%c0_18, %c0_19], %33 {strides = array<i32>} : memref<16x1xf32, #tpu.memory_space<vmem>>, vector<16x1xf32>,
    return
  }
  func.func @transform_0(%arg0: i32) -> (i32, i32) {
    %c0_i32 = arith.constant 0 : i32
    %c0_i32_0 = arith.constant 0 : i32
    return %arg0, %c0_i32 : i32, i32
  }
  func.func @transform_1(%arg0: i32) -> (i32, i32) {
    %c0_i32 = arith.constant 0 : i32
    %c0_i32_0 = arith.constant 0 : i32
    %c0_i32_1 = arith.constant 0 : i32
    return %c0_i32, %c0_i32_0 : i32, i32
  }
  func.func @transform_2(%arg0: i32) -> (i32, i32) {
    %c0_i32 = arith.constant 0 : i32
    %c0_i32_0 = arith.constant 0 : i32
    %c0_i32_1 = arith.constant 0 : i32
    return %c0_i32, %c0_i32_0 : i32, i32
  }
  func.func @transform_3(%arg0: i32) -> (i32, i32) {
    %c0_i32 = arith.constant 0 : i32
    %c0_i32_0 = arith.constant 0 : i32
    %c0_i32_1 = arith.constant 0 : i32
    return %c0_i32, %c0_i32_0 : i32, i32
  }
  func.func @transform_4(%arg0: i32) -> (i32, i32) {
    %c0_i32 = arith.constant 0 : i32
    %c0_i32_0 = arith.constant 0 : i32
    %c0_i32_1 = arith.constant 0 : i32
    return %c0_i32, %c0_i32_0 : i32, i32
  }
  func.func @transform_5(%arg0: i32) -> (i32, i32) {
    %c0_i32 = arith.constant 0 : i32
    %c0_i32_0 = arith.constant 0 : i32
    %c0_i32_1 = arith.constant 0 : i32
    return %c0_i32, %c0_i32_0 : i32, i32
  }
  func.func @transform_6(%arg0: i32) -> (i32, i32) {
    %c0_i32 = arith.constant 0 : i32
    %c0_i32_0 = arith.constant 0 : i32
    %c0_i32_1 = arith.constant 0 : i32
    return %c0_i32, %c0_i32_0 : i32, i32
  }
  func.func @transform_7(%arg0: i32) -> (i32, i32) {
    %c0_i32 = arith.constant 0 : i32
    %c0_i32_0 = arith.constant 0 : i32
    return %arg0, %c0_i32 : i32, i32
  }
}

</mosaic_0001>

<bundles_post_ra>
// kernel: discriminator_forward.1
= control target key start
LH: loop header
LB: loop body
LE: loop exit
PB: predicated region body
PF: predicated region fallthrough
CT: control target
= control target key end

     0   :  { %s1353_s0 = inlined_call_operand.vmem [shape: f32[16,2], index: 0, kind: input, shape index: {}]   ;;  %s1354_s1 = inlined_call_operand.vmem [shape: f32[2,512], index: 1, kind: input, shape index: {}]   ;;  %s1355_s2 = inlined_call_operand.vmem [shape: f32[1,512], index: 2, kind: input, shape index: {}]   ;;  %s1356_s3 = inlined_call_operand.hbm [shape: f32[512,512], index: 3, kind: input, shape index: {}]   ;;  %s1357_s4 = inlined_call_operand.vmem [shape: f32[1,512], index: 4, kind: input, shape index: {}]   ;;  %s1358_s5 = inlined_call_operand.vmem [shape: f32[512,1], index: 5, kind: input, shape index: {}]   ;;  %s1359_s6 = inlined_call_operand.<no memory space> [shape: f32[1,1], index: 6, kind: input, shape index: {}]   ;;  %s1360_s7 = inlined_call_operand.vmem [shape: f32[16,1], index: 7, kind: output, shape index: {}]  }
   0x1   :  { %v12_v0 = vstv %s1359_s6 }
   0x2   :  { %13 = vst [vmem:[#allocation2] sm:$0x1] %v12_v0 }
   0x3   :  { %14 = vsyncpa [#allocation4], 0  ;;  %s25_s28 = sshll.u32 %s1356_s3, 4  ;;  %s1030_s29 = smov [#allocation3]   ;;  %s26_s28 = int_to_ptr.hbm [resolvable:$true] %s25_s28 }
   0x4   :  { %s27_s30 = sshll.u32 %s1030_s29, 4  ;;  %s1031_s8 = smov 512   ;;  %s28_s30 = int_to_ptr.vmem [resolvable:$true] %s27_s30 }
   0x5   :  { %s1032_s9 = smov 32  }
   0x6   :  { %33 = dma.hbm_to_vmem [thread:$0]  %s26_s28, 32768, %s28_s30, [#allocation4], %s1031_s8, %s1031_s8, %s1032_s9  }
   0x7   :  { %1028 = dma.done.wait [#allocation4], 32768  }
   0x8   :  { %1029 = vsyncadd [#allocation4], 4294934528  ;;  %v1033_v1 = vmov 0   ;;  %v44_v2 = vld [vmem:[%s1353_s0] sm:$0xff]  ;;  %v45_v3 = vld [vmem:[%s1353_s0 + $0x8] sm:$0xff]  ;;  %v1034_v20 = vmov 1  }
   0x9   :  { %991 = vset.pattern.permute.xlu0 %v1033_v1  ;;  %993 = vset.pattern.permute.xlu1 %v1033_v1  ;;  %v195_v4 = vld [vmem:[#allocation3 + $0x1e0] sm:$0xff]  ;;  %vm975_vm3 = vcmask 7168  }
   0xa   :  { %49 = vperm.xlu0 %991, %v44_v2   ;;  %54 = vperm.xlu1 %993, %v45_v3   ;;  %v259_v5 = vld [vmem:[#allocation3 + $0x3e0] sm:$0xff] }
   0xb   :  { %v323_v6 = vld [vmem:[#allocation3 + $0x5e0] sm:$0xff]  ;;  %401 = vmatpush.msra.mxu0 %v195_v4  ;;  %424 = vmatpush.msra.mxu1 %v259_v5  ;;  %v196_v5 = vld [vmem:[#allocation3 + $0x1e8] sm:$0xff] }
   0xc   :  { %v387_v7 = vld [vmem:[#allocation3 + $0x7e0] sm:$0xff]  ;;  %447 = vmatpush.msra.mxu2 %v323_v6  ;;  %v260_v6 = vld [vmem:[#allocation3 + $0x3e8] sm:$0xff] }
   0xd   :  { %v191_v8 = vld [vmem:[#allocation3 + $0x1c0] sm:$0xff]  ;;  %470 = vmatpush.msra.mxu3 %v387_v7  ;;  %v324_v7 = vld [vmem:[#allocation3 + $0x5e8] sm:$0xff] }
   0xe   :  { %v255_v9 = vld [vmem:[#allocation3 + $0x3c0] sm:$0xff]  ;;  %402 = vmatpush.msra.mxu0 %v191_v8  ;;  %v388_v8 = vld [vmem:[#allocation3 + $0x7e8] sm:$0xff] }
   0xf   :  { %v319_v10 = vld [vmem:[#allocation3 + $0x5c0] sm:$0xff]  ;;  %425 = vmatpush.msra.mxu1 %v255_v9  ;;  %v192_v9 = vld [vmem:[#allocation3 + $0x1c8] sm:$0xff] }
  0x10   :  { %v383_v11 = vld [vmem:[#allocation3 + $0x7c0] sm:$0xff]  ;;  %448 = vmatpush.msra.mxu2 %v319_v10  ;;  %v256_v10 = vld [vmem:[#allocation3 + $0x3c8] sm:$0xff] }
  0x11   :  { %v187_v12 = vld [vmem:[#allocation3 + $0x1a0] sm:$0xff]  ;;  %471 = vmatpush.msra.mxu3 %v383_v11  ;;  %v320_v11 = vld [vmem:[#allocation3 + $0x5c8] sm:$0xff] }
  0x12   :  { %v251_v13 = vld [vmem:[#allocation3 + $0x3a0] sm:$0xff]  ;;  %403 = vmatpush.msra.mxu0 %v187_v12  ;;  %992 = vset.pattern.permute.xlu0 %v1034_v20  ;;  %v384_v12 = vld [vmem:[#allocation3 + $0x7c8] sm:$0xff] }
  0x13   :  { %v315_v14 = vld [vmem:[#allocation3 + $0x5a0] sm:$0xff]  ;;  %426 = vmatpush.msra.mxu1 %v251_v13  ;;  %994 = vset.pattern.permute.xlu1 %v1034_v20  ;;  %v188_v13 = vld [vmem:[#allocation3 + $0x1a8] sm:$0xff] }
  0x14   :  { %v379_v15 = vld [vmem:[#allocation3 + $0x7a0] sm:$0xff]  ;;  %449 = vmatpush.msra.mxu2 %v315_v14  ;;  %77 = vperm.xlu0 %992, %v44_v2   ;;  %v252_v14 = vld [vmem:[#allocation3 + $0x3a8] sm:$0xff] }
  0x15   :  { %v183_v16 = vld [vmem:[#allocation3 + $0x180] sm:$0xff]  ;;  %472 = vmatpush.msra.mxu3 %v379_v15  ;;  %81 = vperm.xlu1 %994, %v45_v3   ;;  %v316_v15 = vld [vmem:[#allocation3 + $0x5a8] sm:$0xff] }
  0x16   :  { %v247_v17 = vld [vmem:[#allocation3 + $0x380] sm:$0xff]  ;;  %404 = vmatpush.msra.mxu0 %v183_v16  ;;  %v380_v16 = vld [vmem:[#allocation3 + $0x7a8] sm:$0xff] }
  0x17   :  { %427 = vmatpush.msra.mxu1 %v247_v17  ;;  %v311_v18 = vld [vmem:[#allocation3 + $0x580] sm:$0xff]  ;;  %v184_v17 = vld [vmem:[#allocation3 + $0x188] sm:$0xff] }
  0x18   :  { %v375_v19 = vld [vmem:[#allocation3 + $0x780] sm:$0xff]  ;;  %450 = vmatpush.msra.mxu2 %v311_v18  ;;  %v248_v18 = vld [vmem:[#allocation3 + $0x388] sm:$0xff] }
  0x19   :  { %v179_v21 = vld [vmem:[#allocation3 + $0x160] sm:$0xff]  ;;  %473 = vmatpush.msra.mxu3 %v375_v19  ;;  %v312_v19 = vld [vmem:[#allocation3 + $0x588] sm:$0xff] }
  0x1a   :  { %v243_v22 = vld [vmem:[#allocation3 + $0x360] sm:$0xff]  ;;  %405 = vmatpush.msra.mxu0 %v179_v21  ;;  %v376_v20 = vld [vmem:[#allocation3 + $0x788] sm:$0xff] }
  0x1b   :  { %v307_v23 = vld [vmem:[#allocation3 + $0x560] sm:$0xff]  ;;  %428 = vmatpush.msra.mxu1 %v243_v22  ;;  %v180_v21 = vld [vmem:[#allocation3 + $0x168] sm:$0xff] }
  0x1c   :  { %v371_v24 = vld [vmem:[#allocation3 + $0x760] sm:$0xff]  ;;  %451 = vmatpush.msra.mxu2 %v307_v23  ;;  %v244_v22 = vld [vmem:[#allocation3 + $0x368] sm:$0xff] }
  0x1d   :  { %v175_v25 = vld [vmem:[#allocation3 + $0x140] sm:$0xff]  ;;  %474 = vmatpush.msra.mxu3 %v371_v24  ;;  %v308_v23 = vld [vmem:[#allocation3 + $0x568] sm:$0xff] }
  0x1e   :  { %v239_v26 = vld [vmem:[#allocation3 + $0x340] sm:$0xff]  ;;  %406 = vmatpush.msra.mxu0 %v175_v25  ;;  %v372_v24 = vld [vmem:[#allocation3 + $0x768] sm:$0xff] }
  0x1f   :  { %v303_v27 = vld [vmem:[#allocation3 + $0x540] sm:$0xff]  ;;  %429 = vmatpush.msra.mxu1 %v239_v26  ;;  %v176_v25 = vld [vmem:[#allocation3 + $0x148] sm:$0xff] }
  0x20   :  { %v367_v28 = vld [vmem:[#allocation3 + $0x740] sm:$0xff]  ;;  %452 = vmatpush.msra.mxu2 %v303_v27  ;;  %v240_v26 = vld [vmem:[#allocation3 + $0x348] sm:$0xff] }
  0x21   :  { %v171_v29 = vld [vmem:[#allocation3 + $0x120] sm:$0xff]  ;;  %475 = vmatpush.msra.mxu3 %v367_v28  ;;  %v304_v27 = vld [vmem:[#allocation3 + $0x548] sm:$0xff] }
  0x22   :  { %v235_v30 = vld [vmem:[#allocation3 + $0x320] sm:$0xff]  ;;  %407 = vmatpush.msra.mxu0 %v171_v29  ;;  %v368_v28 = vld [vmem:[#allocation3 + $0x748] sm:$0xff] }
  0x23   :  { %v299_v31 = vld [vmem:[#allocation3 + $0x520] sm:$0xff]  ;;  %430 = vmatpush.msra.mxu1 %v235_v30  ;;  %v172_v29 = vld [vmem:[#allocation3 + $0x128] sm:$0xff] }
  0x24   :  { %v363_v32 = vld [vmem:[#allocation3 + $0x720] sm:$0xff]  ;;  %453 = vmatpush.msra.mxu2 %v299_v31  ;;  %v236_v30 = vld [vmem:[#allocation3 + $0x328] sm:$0xff] }
  0x25   :  { %v167_v33 = vld [vmem:[#allocation3 + $0x100] sm:$0xff]  ;;  %476 = vmatpush.msra.mxu3 %v363_v32  ;;  %v300_v31 = vld [vmem:[#allocation3 + $0x528] sm:$0xff] }
  0x26   :  { %v231_v34 = vld [vmem:[#allocation3 + $0x300] sm:$0xff]  ;;  %408 = vmatpush.msra.mxu0 %v167_v33  ;;  %v364_v32 = vld [vmem:[#allocation3 + $0x728] sm:$0xff] }
  0x27   :  { %v295_v35 = vld [vmem:[#allocation3 + $0x500] sm:$0xff]  ;;  %431 = vmatpush.msra.mxu1 %v231_v34  ;;  %v168_v33 = vld [vmem:[#allocation3 + $0x108] sm:$0xff] }
  0x28   :  { %v359_v36 = vld [vmem:[#allocation3 + $0x700] sm:$0xff]  ;;  %454 = vmatpush.msra.mxu2 %v295_v35  ;;  %v232_v34 = vld [vmem:[#allocation3 + $0x308] sm:$0xff] }
  0x29   :  { %v163_v37 = vld [vmem:[#allocation3 + $0xe0] sm:$0xff]  ;;  %477 = vmatpush.msra.mxu3 %v359_v36  ;;  %v296_v35 = vld [vmem:[#allocation3 + $0x508] sm:$0xff] }
  0x2a   :  { %v227_v38 = vld [vmem:[#allocation3 + $0x2e0] sm:$0xff]  ;;  %409 = vmatpush.msra.mxu0 %v163_v37  ;;  %v360_v36 = vld [vmem:[#allocation3 + $0x708] sm:$0xff] }
  0x2b   :  { %v291_v39 = vld [vmem:[#allocation3 + $0x4e0] sm:$0xff]  ;;  %432 = vmatpush.msra.mxu1 %v227_v38  ;;  %v164_v37 = vld [vmem:[#allocation3 + $0xe8] sm:$0xff] }
  0x2c   :  { %v355_v40 = vld [vmem:[#allocation3 + $0x6e0] sm:$0xff]  ;;  %455 = vmatpush.msra.mxu2 %v291_v39  ;;  %v228_v38 = vld [vmem:[#allocation3 + $0x2e8] sm:$0xff] }
  0x2d   :  { %v159_v41 = vld [vmem:[#allocation3 + $0xc0] sm:$0xff]  ;;  %478 = vmatpush.msra.mxu3 %v355_v40  ;;  %v292_v39 = vld [vmem:[#allocation3 + $0x4e8] sm:$0xff] }
  0x2e   :  { %v223_v42 = vld [vmem:[#allocation3 + $0x2c0] sm:$0xff]  ;;  %410 = vmatpush.msra.mxu0 %v159_v41  ;;  %v356_v40 = vld [vmem:[#allocation3 + $0x6e8] sm:$0xff] }
  0x2f   :  { %v287_v43 = vld [vmem:[#allocation3 + $0x4c0] sm:$0xff]  ;;  %433 = vmatpush.msra.mxu1 %v223_v42  ;;  %v160_v41 = vld [vmem:[#allocation3 + $0xc8] sm:$0xff] }
  0x30   :  { %v351_v44 = vld [vmem:[#allocation3 + $0x6c0] sm:$0xff]  ;;  %456 = vmatpush.msra.mxu2 %v287_v43  ;;  %v224_v42 = vld [vmem:[#allocation3 + $0x2c8] sm:$0xff] }
  0x31   :  { %v155_v45 = vld [vmem:[#allocation3 + $0xa0] sm:$0xff]  ;;  %479 = vmatpush.msra.mxu3 %v351_v44  ;;  %v288_v43 = vld [vmem:[#allocation3 + $0x4c8] sm:$0xff] }
  0x32   :  { %v219_v46 = vld [vmem:[#allocation3 + $0x2a0] sm:$0xff]  ;;  %411 = vmatpush.msra.mxu0 %v155_v45  ;;  %v352_v44 = vld [vmem:[#allocation3 + $0x6c8] sm:$0xff] }
  0x33   :  { %v283_v47 = vld [vmem:[#allocation3 + $0x4a0] sm:$0xff]  ;;  %434 = vmatpush.msra.mxu1 %v219_v46  ;;  %v156_v45 = vld [vmem:[#allocation3 + $0xa8] sm:$0xff] }
  0x34   :  { %v347_v48 = vld [vmem:[#allocation3 + $0x6a0] sm:$0xff]  ;;  %457 = vmatpush.msra.mxu2 %v283_v47  ;;  %v220_v46 = vld [vmem:[#allocation3 + $0x2a8] sm:$0xff] }
  0x35   :  { %v151_v49 = vld [vmem:[#allocation3 + $0x80] sm:$0xff]  ;;  %480 = vmatpush.msra.mxu3 %v347_v48  ;;  %v284_v47 = vld [vmem:[#allocation3 + $0x4a8] sm:$0xff] }
  0x36   :  { %v215_v50 = vld [vmem:[#allocation3 + $0x280] sm:$0xff]  ;;  %412 = vmatpush.msra.mxu0 %v151_v49  ;;  %v348_v48 = vld [vmem:[#allocation3 + $0x6a8] sm:$0xff] }
  0x37   :  { %v279_v51 = vld [vmem:[#allocation3 + $0x480] sm:$0xff]  ;;  %435 = vmatpush.msra.mxu1 %v215_v50  ;;  %v152_v49 = vld [vmem:[#allocation3 + $0x88] sm:$0xff] }
  0x38   :  { %v343_v52 = vld [vmem:[#allocation3 + $0x680] sm:$0xff]  ;;  %458 = vmatpush.msra.mxu2 %v279_v51  ;;  %v216_v50 = vld [vmem:[#allocation3 + $0x288] sm:$0xff] }
  0x39   :  { %v147_v53 = vld [vmem:[#allocation3 + $0x60] sm:$0xff]  ;;  %481 = vmatpush.msra.mxu3 %v343_v52  ;;  %v280_v51 = vld [vmem:[#allocation3 + $0x488] sm:$0xff] }
  0x3a   :  { %v211_v54 = vld [vmem:[#allocation3 + $0x260] sm:$0xff]  ;;  %413 = vmatpush.msra.mxu0 %v147_v53  ;;  %v344_v52 = vld [vmem:[#allocation3 + $0x688] sm:$0xff] }
  0x3b   :  { %v275_v55 = vld [vmem:[#allocation3 + $0x460] sm:$0xff]  ;;  %436 = vmatpush.msra.mxu1 %v211_v54  ;;  %v148_v53 = vld [vmem:[#allocation3 + $0x68] sm:$0xff] }
  0x3c   :  { %v339_v56 = vld [vmem:[#allocation3 + $0x660] sm:$0xff]  ;;  %459 = vmatpush.msra.mxu2 %v275_v55  ;;  %v212_v54 = vld [vmem:[#allocation3 + $0x268] sm:$0xff] }
  0x3d   :  { %v143_v57 = vld [vmem:[#allocation3 + $0x40] sm:$0xff]  ;;  %482 = vmatpush.msra.mxu3 %v339_v56  ;;  %v276_v55 = vld [vmem:[#allocation3 + $0x468] sm:$0xff] }
  0x3e   :  { %v207_v58 = vld [vmem:[#allocation3 + $0x240] sm:$0xff]  ;;  %414 = vmatpush.msra.mxu0 %v143_v57  ;;  %v340_v56 = vld [vmem:[#allocation3 + $0x668] sm:$0xff] }
  0x3f   :  { %v271_v59 = vld [vmem:[#allocation3 + $0x440] sm:$0xff]  ;;  %437 = vmatpush.msra.mxu1 %v207_v58  ;;  %v144_v57 = vld [vmem:[#allocation3 + $0x48] sm:$0xff] }
  0x40   :  { %v335_v60 = vld [vmem:[#allocation3 + $0x640] sm:$0xff]  ;;  %460 = vmatpush.msra.mxu2 %v271_v59  ;;  %v208_v58 = vld [vmem:[#allocation3 + $0x248] sm:$0xff] }
  0x41   :  { %v139_v61 = vld [vmem:[#allocation3 + $0x20] sm:$0xff]  ;;  %483 = vmatpush.msra.mxu3 %v335_v60  ;;  %v272_v59 = vld [vmem:[#allocation3 + $0x448] sm:$0xff] }
  0x42   :  { %v203_v62 = vld [vmem:[#allocation3 + $0x220] sm:$0xff]  ;;  %415 = vmatpush.msra.mxu0 %v139_v61  ;;  %v336_v60 = vld [vmem:[#allocation3 + $0x648] sm:$0xff] }
  0x43   :  { %v267_v63 = vld [vmem:[#allocation3 + $0x420] sm:$0xff]  ;;  %438 = vmatpush.msra.mxu1 %v203_v62  ;;  %v140_v61 = vld [vmem:[#allocation3 + $0x28] sm:$0xff] }
  0x44   :  { %v331_v0 = vld [vmem:[#allocation3 + $0x620] sm:$0xff]  ;;  %461 = vmatpush.msra.mxu2 %v267_v63  ;;  %v204_v62 = vld [vmem:[#allocation3 + $0x228] sm:$0xff] }
  0x45   :  { %v135_v1 = vld [vmem:[#allocation3] sm:$0xff]  ;;  %484 = vmatpush.msra.mxu3 %v331_v0  ;;  %v268_v63 = vld [vmem:[#allocation3 + $0x428] sm:$0xff] }
  0x46   :  { %v199_v2 = vld [vmem:[#allocation3 + $0x200] sm:$0xff]  ;;  %416 = vmatpush.msra.mxu0 %v135_v1  ;;  %v332_v0 = vld [vmem:[#allocation3 + $0x628] sm:$0xff] }
  0x47   :  { %v263_v3 = vld [vmem:[#allocation3 + $0x400] sm:$0xff]  ;;  %439 = vmatpush.msra.mxu1 %v199_v2  ;;  %v136_v1 = vld [vmem:[#allocation3 + $0x8] sm:$0xff] }
  0x48   :  { %v327_v4 = vld [vmem:[#allocation3 + $0x600] sm:$0xff]  ;;  %462 = vmatpush.msra.mxu2 %v263_v3  ;;  %493 = vmatpush.msrb.mxu0 %v196_v5  ;;  %v200_v2 = vld [vmem:[#allocation3 + $0x208] sm:$0xff] }
  0x49   :  { %485 = vmatpush.msra.mxu3 %v327_v4  ;;  %516 = vmatpush.msrb.mxu1 %v260_v6  ;;  %v264_v3 = vld [vmem:[#allocation3 + $0x408] sm:$0xff] }
  0x4a   :  { %539 = vmatpush.msrb.mxu2 %v324_v7  ;;  %494 = vmatpush.msrb.mxu0 %v192_v9  ;;  %v328_v4 = vld [vmem:[#allocation3 + $0x608] sm:$0xff]  ;;  %v46_v7 = vld [vmem:[%s1354_s1] ss:$2 sm:$0xf] }
  0x4b   :  { %562 = vmatpush.msrb.mxu3 %v388_v8  ;;  %517 = vmatpush.msrb.mxu1 %v256_v10  ;;  %v983_v8 = vld [vmem:[%s1354_s1 + $0x1] ss:$2 sm:$0xf]  ;;  %v58_v9 = vperm.slane %v46_v7, 0  ;;  %v59_v10 = vperm.slane %v46_v7, 1 }
  0x4c   :  { %540 = vmatpush.msrb.mxu2 %v320_v11  ;;  %495 = vmatpush.msrb.mxu0 %v188_v13  ;;  %v60_v11 = vperm.slane %v46_v7, 2  ;;  %v109_v13 = vld [vmem:[%s1355_s2] sm:$0xf] }
  0x4d   :  { %563 = vmatpush.msrb.mxu3 %v384_v12  ;;  %518 = vmatpush.msrb.mxu1 %v252_v14  ;;  %v61_v12 = vperm.slane %v46_v7, 3  ;;  %v85_v14 = vperm.slane %v983_v8, 0  ;;  %v381_v7 = vld [vmem:[#allocation3 + $0x7b0] sm:$0xff] }
  0x4e   :  { %541 = vmatpush.msrb.mxu2 %v316_v15  ;;  %496 = vmatpush.msrb.mxu0 %v184_v17  ;;  %v86_v15 = vperm.slane %v983_v8, 1  ;;  %v88_v17 = vperm.slane %v983_v8, 3 }
  0x4f   :  { %564 = vmatpush.msrb.mxu3 %v380_v16  ;;  %519 = vmatpush.msrb.mxu1 %v248_v18  ;;  %v87_v16 = vperm.slane %v983_v8, 2  ;;  %v111_v18 = vperm.slane %v109_v13, 0  ;;  %v185_v8 = vld [vmem:[#allocation3 + $0x190] sm:$0xff] }
  0x50   :  { %542 = vmatpush.msrb.mxu2 %v312_v19  ;;  %497 = vmatpush.msrb.mxu0 %v180_v21  ;;  %v112_v19 = vperm.slane %v109_v13, 1  ;;  %v114_v21 = vperm.slane %v109_v13, 3 }
  0x51   :  { %565 = vmatpush.msrb.mxu3 %v376_v20  ;;  %520 = vmatpush.msrb.mxu1 %v244_v22  ;;  %v113_v20 = vperm.slane %v109_v13, 2 }
  0x52   :  { %543 = vmatpush.msrb.mxu2 %v308_v23  ;;  %498 = vmatpush.msrb.mxu0 %v176_v25 }
  0x53   :  { %566 = vmatpush.msrb.mxu3 %v372_v24  ;;  %521 = vmatpush.msrb.mxu1 %v240_v26 }
  0x54   :  { %544 = vmatpush.msrb.mxu2 %v304_v27  ;;  %499 = vmatpush.msrb.mxu0 %v172_v29 }
  0x55   :  { %567 = vmatpush.msrb.mxu3 %v368_v28  ;;  %522 = vmatpush.msrb.mxu1 %v236_v30 }
  0x56   :  { %545 = vmatpush.msrb.mxu2 %v300_v31  ;;  %500 = vmatpush.msrb.mxu0 %v168_v33 }
  0x57   :  { %568 = vmatpush.msrb.mxu3 %v364_v32  ;;  %523 = vmatpush.msrb.mxu1 %v232_v34 }
  0x58   :  { %546 = vmatpush.msrb.mxu2 %v296_v35  ;;  %501 = vmatpush.msrb.mxu0 %v164_v37 }
  0x59   :  { %569 = vmatpush.msrb.mxu3 %v360_v36  ;;  %524 = vmatpush.msrb.mxu1 %v228_v38 }
  0x5a   :  { %547 = vmatpush.msrb.mxu2 %v292_v39  ;;  %502 = vmatpush.msrb.mxu0 %v160_v41 }
  0x5b   :  { %570 = vmatpush.msrb.mxu3 %v356_v40  ;;  %525 = vmatpush.msrb.mxu1 %v224_v42 }
  0x5c   :  { %548 = vmatpush.msrb.mxu2 %v288_v43  ;;  %503 = vmatpush.msrb.mxu0 %v156_v45 }
  0x5d   :  { %571 = vmatpush.msrb.mxu3 %v352_v44  ;;  %526 = vmatpush.msrb.mxu1 %v220_v46 }
  0x5e   :  { %549 = vmatpush.msrb.mxu2 %v284_v47  ;;  %504 = vmatpush.msrb.mxu0 %v152_v49 }
  0x5f   :  { %572 = vmatpush.msrb.mxu3 %v348_v48  ;;  %527 = vmatpush.msrb.mxu1 %v216_v50 }
  0x60   :  { %550 = vmatpush.msrb.mxu2 %v280_v51  ;;  %505 = vmatpush.msrb.mxu0 %v148_v53 }
  0x61   :  { %573 = vmatpush.msrb.mxu3 %v344_v52  ;;  %528 = vmatpush.msrb.mxu1 %v212_v54 }
  0x62   :  { %551 = vmatpush.msrb.mxu2 %v276_v55  ;;  %506 = vmatpush.msrb.mxu0 %v144_v57  ;;  %v261_v57 = vld [vmem:[#allocation3 + $0x3f0] sm:$0xff] }
  0x63   :  { %574 = vmatpush.msrb.mxu3 %v340_v56  ;;  %529 = vmatpush.msrb.mxu1 %v208_v58  ;;  %v197_v56 = vld [vmem:[#allocation3 + $0x1f0] sm:$0xff] }
  0x64   :  { %552 = vmatpush.msrb.mxu2 %v272_v59  ;;  %507 = vmatpush.msrb.mxu0 %v140_v61  ;;  %v325_v58 = vld [vmem:[#allocation3 + $0x5f0] sm:$0xff] }
  0x65   :  { %575 = vmatpush.msrb.mxu3 %v336_v60  ;;  %530 = vmatpush.msrb.mxu1 %v204_v62  ;;  %v389_v59 = vld [vmem:[#allocation3 + $0x7f0] sm:$0xff] }
  0x66   :  { %553 = vmatpush.msrb.mxu2 %v268_v63  ;;  %508 = vmatpush.msrb.mxu0 %v136_v1  ;;  %v193_v60 = vld [vmem:[#allocation3 + $0x1d0] sm:$0xff] }
  0x67   :  { %576 = vmatpush.msrb.mxu3 %v332_v0  ;;  %531 = vmatpush.msrb.mxu1 %v200_v2  ;;  %v257_v61 = vld [vmem:[#allocation3 + $0x3d0] sm:$0xff] }
  0x68   :  { %554 = vmatpush.msrb.mxu2 %v264_v3  ;;  %v321_v0 = vld [vmem:[#allocation3 + $0x5d0] sm:$0xff] }
  0x69   :  { %577 = vmatpush.msrb.mxu3 %v328_v4  ;;  %v385_v1 = vld [vmem:[#allocation3 + $0x7d0] sm:$0xff] }
  0x6a   :  { %v189_v4 = vld [vmem:[#allocation3 + $0x1b0] sm:$0xff] }
  0x7c   :  { %v50_v5 = vpop.permute.xlu0 %49  ;;  %v55_v6 = vpop.permute.xlu1 %54 }
  0x7d   :  { %v66_v22 = vmul.f32 %v58_v9, %v50_v5  ;;  %v67_v23 = vmul.f32 %v59_v10, %v50_v5  ;;  %v68_v24 = vmul.f32 %v60_v11, %v50_v5  ;;  %v69_v25 = vmul.f32 %v61_v12, %v50_v5  ;;  %v253_v5 = vld [vmem:[#allocation3 + $0x3b0] sm:$0xff] }
  0x7e   :  { %v70_v32 = vmul.f32 %v58_v9, %v55_v6  ;;  %v71_v33 = vmul.f32 %v59_v10, %v55_v6  ;;  %v72_v40 = vmul.f32 %v60_v11, %v55_v6  ;;  %v73_v41 = vmul.f32 %v61_v12, %v55_v6  ;;  %v317_v6 = vld [vmem:[#allocation3 + $0x5b0] sm:$0xff] }
  0x7f   :  { %v249_v9 = vld [vmem:[#allocation3 + $0x390] sm:$0xff] }
  0x80   :  { %v313_v10 = vld [vmem:[#allocation3 + $0x590] sm:$0xff] }
  0x81   :  { %v377_v11 = vld [vmem:[#allocation3 + $0x790] sm:$0xff] }
  0x86   :  { %v78_v26 = vpop.permute.xlu0 %77 }
  0x87   :  { %v82_v27 = vpop.permute.xlu1 %81  ;;  %v93_v28 = vmul.f32 %v85_v14, %v78_v26  ;;  %v94_v29 = vmul.f32 %v86_v15, %v78_v26  ;;  %v95_v30 = vmul.f32 %v87_v16, %v78_v26  ;;  %v96_v31 = vmul.f32 %v88_v17, %v78_v26  ;;  %v301_v26 = vld [vmem:[#allocation3 + $0x530] sm:$0xff] }
  0x88   :  { %v97_v34 = vmul.f32 %v85_v14, %v82_v27  ;;  %v98_v35 = vmul.f32 %v86_v15, %v82_v27  ;;  %v99_v42 = vmul.f32 %v87_v16, %v82_v27  ;;  %v100_v43 = vmul.f32 %v88_v17, %v82_v27  ;;  %v181_v16 = vld [vmem:[#allocation3 + $0x170] sm:$0xff] }
  0x89   :  { %v101_v36 = vadd.f32 %v93_v28, %v66_v22  ;;  %v102_v37 = vadd.f32 %v94_v29, %v67_v23  ;;  %v103_v38 = vadd.f32 %v95_v30, %v68_v24  ;;  %v104_v39 = vadd.f32 %v96_v31, %v69_v25  ;;  %v245_v17 = vld [vmem:[#allocation3 + $0x370] sm:$0xff] }
  0x8a   :  { %v105_v48 = vadd.f32 %v97_v34, %v70_v32  ;;  %v106_v49 = vadd.f32 %v98_v35, %v71_v33  ;;  %v107_v54 = vadd.f32 %v99_v42, %v72_v40  ;;  %v108_v55 = vadd.f32 %v100_v43, %v73_v41  ;;  %v305_v22 = vld [vmem:[#allocation3 + $0x550] sm:$0xff] }
  0x8b   :  { %v119_v44 = vadd.f32 %v111_v18, %v101_v36  ;;  %v120_v45 = vadd.f32 %v112_v19, %v102_v37  ;;  %v121_v46 = vadd.f32 %v113_v20, %v103_v38  ;;  %v122_v47 = vadd.f32 %v114_v21, %v104_v39  ;;  %v369_v23 = vld [vmem:[#allocation3 + $0x750] sm:$0xff] }
  0x8c   :  { %v123_v62 = vadd.f32 %v111_v18, %v105_v48  ;;  %v124_v63 = vadd.f32 %v112_v19, %v106_v49  ;;  %v125_v2 = vadd.f32 %v113_v20, %v107_v54  ;;  %v126_v3 = vadd.f32 %v114_v21, %v108_v55  ;;  %v309_v18 = vld [vmem:[#allocation3 + $0x570] sm:$0xff] }
  0x8d   :  { %v1096_v50 = vmax.f32 %v119_v44, 0.0  ;;  %v1098_v51 = vmax.f32 %v120_v45, 0.0  ;;  %v1100_v52 = vmax.f32 %v121_v46, 0.0  ;;  %v1102_v53 = vmax.f32 %v122_v47, 0.0  ;;  %v373_v19 = vld [vmem:[#allocation3 + $0x770] sm:$0xff] }
  0x8e   :  { %v1108_v12 = vmax.f32 %v123_v62, 0.0  ;;  %v1110_v13 = vmax.f32 %v124_v63, 0.0  ;;  %v1112_v14 = vmax.f32 %v125_v2, 0.0  ;;  %v1114_v15 = vmax.f32 %v126_v3, 0.0  ;;  %v177_v20 = vld [vmem:[#allocation3 + $0x150] sm:$0xff] }
  0x8f   :  { %417 = vmatmul.f32.vlgmr.msra.gmra.mxu0 %v1096_v50  ;;  %440 = vmatmul.f32.vlgmr.msra.gmra.mxu1 %v1098_v51  ;;  %v241_v21 = vld [vmem:[#allocation3 + $0x350] sm:$0xff] }
  0x90   :  { %463 = vmatmul.f32.vlgmr.msra.gmra.mxu2 %v1100_v52  ;;  %486 = vmatmul.f32.vlgmr.msra.gmra.mxu3 %v1102_v53  ;;  %v173_v24 = vld [vmem:[#allocation3 + $0x130] sm:$0xff] }
  0x91   :  { %585 = vmatpush.msra.mxu0 %v197_v56  ;;  %608 = vmatpush.msra.mxu1 %v261_v57  ;;  %v237_v25 = vld [vmem:[#allocation3 + $0x330] sm:$0xff] }
  0x92   :  { %631 = vmatpush.msra.mxu2 %v325_v58  ;;  %654 = vmatpush.msra.mxu3 %v389_v59  ;;  %v365_v27 = vld [vmem:[#allocation3 + $0x730] sm:$0xff] }
  0x93   :  { %586 = vmatpush.msra.mxu0 %v193_v60  ;;  %609 = vmatpush.msra.mxu1 %v257_v61  ;;  %v169_v28 = vld [vmem:[#allocation3 + $0x110] sm:$0xff] }
  0x94   :  { %632 = vmatpush.msra.mxu2 %v321_v0  ;;  %655 = vmatpush.msra.mxu3 %v385_v1  ;;  %v233_v29 = vld [vmem:[#allocation3 + $0x310] sm:$0xff] }
  0x95   :  { %587 = vmatpush.msra.mxu0 %v189_v4  ;;  %610 = vmatpush.msra.mxu1 %v253_v5  ;;  %v297_v30 = vld [vmem:[#allocation3 + $0x510] sm:$0xff]  ;;  %v198_v4 = vld [vmem:[#allocation3 + $0x1f8] sm:$0xff] }
  0x96   :  { %633 = vmatpush.msra.mxu2 %v317_v6  ;;  %656 = vmatpush.msra.mxu3 %v381_v7  ;;  %v361_v31 = vld [vmem:[#allocation3 + $0x710] sm:$0xff]  ;;  %v262_v5 = vld [vmem:[#allocation3 + $0x3f8] sm:$0xff] }
  0x97   :  { %588 = vmatpush.msra.mxu0 %v185_v8  ;;  %611 = vmatpush.msra.mxu1 %v249_v9  ;;  %v165_v32 = vld [vmem:[#allocation3 + $0xf0] sm:$0xff]  ;;  %v326_v6 = vld [vmem:[#allocation3 + $0x5f8] sm:$0xff] }
  0x98   :  { %634 = vmatpush.msra.mxu2 %v313_v10  ;;  %657 = vmatpush.msra.mxu3 %v377_v11  ;;  %v229_v33 = vld [vmem:[#allocation3 + $0x2f0] sm:$0xff]  ;;  %v390_v7 = vld [vmem:[#allocation3 + $0x7f8] sm:$0xff] }
  0x99   :  { %420 = vmatmul.f32.gmra.mxu0 %v1108_v12  ;;  %443 = vmatmul.f32.gmra.mxu1 %v1110_v13  ;;  %v293_v34 = vld [vmem:[#allocation3 + $0x4f0] sm:$0xff]  ;;  %v194_v8 = vld [vmem:[#allocation3 + $0x1d8] sm:$0xff] }
  0x9a   :  { %466 = vmatmul.f32.gmra.mxu2 %v1112_v14  ;;  %489 = vmatmul.f32.gmra.mxu3 %v1114_v15  ;;  %v357_v35 = vld [vmem:[#allocation3 + $0x6f0] sm:$0xff]  ;;  %v258_v9 = vld [vmem:[#allocation3 + $0x3d8] sm:$0xff] }
  0x9b   :  { %589 = vmatpush.msra.mxu0 %v181_v16  ;;  %612 = vmatpush.msra.mxu1 %v245_v17  ;;  %v161_v36 = vld [vmem:[#allocation3 + $0xd0] sm:$0xff]  ;;  %v322_v10 = vld [vmem:[#allocation3 + $0x5d8] sm:$0xff] }
  0x9c   :  { %635 = vmatpush.msra.mxu2 %v309_v18  ;;  %658 = vmatpush.msra.mxu3 %v373_v19  ;;  %v225_v37 = vld [vmem:[#allocation3 + $0x2d0] sm:$0xff]  ;;  %v386_v11 = vld [vmem:[#allocation3 + $0x7d8] sm:$0xff] }
  0x9d   :  { %590 = vmatpush.msra.mxu0 %v177_v20  ;;  %613 = vmatpush.msra.mxu1 %v241_v21  ;;  %v289_v38 = vld [vmem:[#allocation3 + $0x4d0] sm:$0xff]  ;;  %v190_v16 = vld [vmem:[#allocation3 + $0x1b8] sm:$0xff] }
  0x9e   :  { %636 = vmatpush.msra.mxu2 %v305_v22  ;;  %659 = vmatpush.msra.mxu3 %v369_v23  ;;  %v353_v39 = vld [vmem:[#allocation3 + $0x6d0] sm:$0xff]  ;;  %v254_v17 = vld [vmem:[#allocation3 + $0x3b8] sm:$0xff] }
  0x9f   :  { %591 = vmatpush.msra.mxu0 %v173_v24  ;;  %614 = vmatpush.msra.mxu1 %v237_v25  ;;  %v157_v40 = vld [vmem:[#allocation3 + $0xb0] sm:$0xff]  ;;  %v318_v18 = vld [vmem:[#allocation3 + $0x5b8] sm:$0xff] }
  0xa0   :  { %637 = vmatpush.msra.mxu2 %v301_v26  ;;  %660 = vmatpush.msra.mxu3 %v365_v27  ;;  %v221_v41 = vld [vmem:[#allocation3 + $0x2b0] sm:$0xff]  ;;  %v382_v19 = vld [vmem:[#allocation3 + $0x7b8] sm:$0xff] }
  0xa1   :  { %592 = vmatpush.msra.mxu0 %v169_v28  ;;  %615 = vmatpush.msra.mxu1 %v233_v29  ;;  %v285_v42 = vld [vmem:[#allocation3 + $0x4b0] sm:$0xff]  ;;  %v186_v20 = vld [vmem:[#allocation3 + $0x198] sm:$0xff] }
  0xa2   :  { %638 = vmatpush.msra.mxu2 %v297_v30  ;;  %661 = vmatpush.msra.mxu3 %v361_v31  ;;  %v349_v43 = vld [vmem:[#allocation3 + $0x6b0] sm:$0xff]  ;;  %v250_v21 = vld [vmem:[#allocation3 + $0x398] sm:$0xff] }
  0xa3   :  { %509 = vmatmul.f32.vlgmr.msrb.gmra.mxu0 %v1096_v50  ;;  %532 = vmatmul.f32.vlgmr.msrb.gmra.mxu1 %v1098_v51  ;;  %v153_v44 = vld [vmem:[#allocation3 + $0x90] sm:$0xff]  ;;  %v314_v22 = vld [vmem:[#allocation3 + $0x598] sm:$0xff] }
  0xa4   :  { %555 = vmatmul.f32.vlgmr.msrb.gmra.mxu2 %v1100_v52  ;;  %578 = vmatmul.f32.vlgmr.msrb.gmra.mxu3 %v1102_v53  ;;  %v217_v45 = vld [vmem:[#allocation3 + $0x290] sm:$0xff]  ;;  %v378_v23 = vld [vmem:[#allocation3 + $0x798] sm:$0xff] }
  0xa5   :  { %593 = vmatpush.msra.mxu0 %v165_v32  ;;  %616 = vmatpush.msra.mxu1 %v229_v33  ;;  %v281_v46 = vld [vmem:[#allocation3 + $0x490] sm:$0xff]  ;;  %v182_v24 = vld [vmem:[#allocation3 + $0x178] sm:$0xff] }
  0xa6   :  { %639 = vmatpush.msra.mxu2 %v293_v34  ;;  %662 = vmatpush.msra.mxu3 %v357_v35  ;;  %v345_v47 = vld [vmem:[#allocation3 + $0x690] sm:$0xff]  ;;  %v246_v25 = vld [vmem:[#allocation3 + $0x378] sm:$0xff] }
  0xa7   :  { %594 = vmatpush.msra.mxu0 %v161_v36  ;;  %617 = vmatpush.msra.mxu1 %v225_v37  ;;  %v149_v48 = vld [vmem:[#allocation3 + $0x70] sm:$0xff]  ;;  %v310_v26 = vld [vmem:[#allocation3 + $0x578] sm:$0xff] }
  0xa8   :  { %640 = vmatpush.msra.mxu2 %v289_v38  ;;  %663 = vmatpush.msra.mxu3 %v353_v39  ;;  %v213_v49 = vld [vmem:[#allocation3 + $0x270] sm:$0xff]  ;;  %v374_v27 = vld [vmem:[#allocation3 + $0x778] sm:$0xff] }
  0xa9   :  { %595 = vmatpush.msra.mxu0 %v157_v40  ;;  %618 = vmatpush.msra.mxu1 %v221_v41  ;;  %v277_v54 = vld [vmem:[#allocation3 + $0x470] sm:$0xff]  ;;  %v178_v28 = vld [vmem:[#allocation3 + $0x158] sm:$0xff] }
  0xaa   :  { %641 = vmatpush.msra.mxu2 %v285_v42  ;;  %664 = vmatpush.msra.mxu3 %v349_v43  ;;  %v341_v55 = vld [vmem:[#allocation3 + $0x670] sm:$0xff]  ;;  %v242_v29 = vld [vmem:[#allocation3 + $0x358] sm:$0xff] }
  0xab   :  { %596 = vmatpush.msra.mxu0 %v153_v44  ;;  %619 = vmatpush.msra.mxu1 %v217_v45  ;;  %v145_v56 = vld [vmem:[#allocation3 + $0x50] sm:$0xff]  ;;  %v306_v30 = vld [vmem:[#allocation3 + $0x558] sm:$0xff] }
  0xac   :  { %642 = vmatpush.msra.mxu2 %v281_v46  ;;  %665 = vmatpush.msra.mxu3 %v345_v47  ;;  %v209_v57 = vld [vmem:[#allocation3 + $0x250] sm:$0xff]  ;;  %v370_v31 = vld [vmem:[#allocation3 + $0x758] sm:$0xff] }
  0xad   :  { %512 = vmatmul.f32.gmra.mxu0 %v1108_v12  ;;  %535 = vmatmul.f32.gmra.mxu1 %v1110_v13  ;;  %v273_v58 = vld [vmem:[#allocation3 + $0x450] sm:$0xff]  ;;  %v174_v32 = vld [vmem:[#allocation3 + $0x138] sm:$0xff] }
  0xae   :  { %558 = vmatmul.f32.gmra.mxu2 %v1112_v14  ;;  %581 = vmatmul.f32.gmra.mxu3 %v1114_v15  ;;  %v337_v59 = vld [vmem:[#allocation3 + $0x650] sm:$0xff]  ;;  %v238_v33 = vld [vmem:[#allocation3 + $0x338] sm:$0xff] }
  0xaf   :  { %597 = vmatpush.msra.mxu0 %v149_v48  ;;  %620 = vmatpush.msra.mxu1 %v213_v49  ;;  %v141_v60 = vld [vmem:[#allocation3 + $0x30] sm:$0xff]  ;;  %v302_v34 = vld [vmem:[#allocation3 + $0x538] sm:$0xff] }
  0xb0   :  { %643 = vmatpush.msra.mxu2 %v277_v54  ;;  %666 = vmatpush.msra.mxu3 %v341_v55  ;;  %v205_v61 = vld [vmem:[#allocation3 + $0x230] sm:$0xff]  ;;  %v366_v35 = vld [vmem:[#allocation3 + $0x738] sm:$0xff] }
  0xb1   :  { %598 = vmatpush.msra.mxu0 %v145_v56  ;;  %621 = vmatpush.msra.mxu1 %v209_v57  ;;  %v269_v62 = vld [vmem:[#allocation3 + $0x430] sm:$0xff]  ;;  %v170_v36 = vld [vmem:[#allocation3 + $0x118] sm:$0xff] }
  0xb2   :  { %v333_v63 = vld [vmem:[#allocation3 + $0x630] sm:$0xff]  ;;  %644 = vmatpush.msra.mxu2 %v273_v58  ;;  %667 = vmatpush.msra.mxu3 %v337_v59  ;;  %v234_v37 = vld [vmem:[#allocation3 + $0x318] sm:$0xff] }
  0xb3   :  { %v137_v0 = vld [vmem:[#allocation3 + $0x10] sm:$0xff]  ;;  %599 = vmatpush.msra.mxu0 %v141_v60  ;;  %622 = vmatpush.msra.mxu1 %v205_v61  ;;  %v298_v38 = vld [vmem:[#allocation3 + $0x518] sm:$0xff] }
  0xb4   :  { %v201_v1 = vld [vmem:[#allocation3 + $0x210] sm:$0xff]  ;;  %645 = vmatpush.msra.mxu2 %v269_v62  ;;  %668 = vmatpush.msra.mxu3 %v333_v63  ;;  %v362_v39 = vld [vmem:[#allocation3 + $0x718] sm:$0xff] }
  0xb5   :  { %v265_v2 = vld [vmem:[#allocation3 + $0x410] sm:$0xff]  ;;  %600 = vmatpush.msra.mxu0 %v137_v0  ;;  %623 = vmatpush.msra.mxu1 %v201_v1  ;;  %v166_v40 = vld [vmem:[#allocation3 + $0xf8] sm:$0xff] }
  0xb6   :  { %v329_v3 = vld [vmem:[#allocation3 + $0x610] sm:$0xff]  ;;  %646 = vmatpush.msra.mxu2 %v265_v2  ;;  %601 = vmatmul.f32.vlgmr.msra.gmra.mxu0 %v1096_v50  ;;  %v230_v41 = vld [vmem:[#allocation3 + $0x2f8] sm:$0xff] }
  0xb7   :  { %669 = vmatpush.msra.mxu3 %v329_v3  ;;  %677 = vmatpush.msrb.mxu0 %v198_v4  ;;  %v294_v42 = vld [vmem:[#allocation3 + $0x4f8] sm:$0xff] }
  0xb8   :  { %700 = vmatpush.msrb.mxu1 %v262_v5  ;;  %723 = vmatpush.msrb.mxu2 %v326_v6  ;;  %v358_v43 = vld [vmem:[#allocation3 + $0x6f8] sm:$0xff] }
  0xb9   :  { %746 = vmatpush.msrb.mxu3 %v390_v7  ;;  %624 = vmatmul.f32.vlgmr.msra.gmra.mxu1 %v1098_v51  ;;  %v162_v44 = vld [vmem:[#allocation3 + $0xd8] sm:$0xff] }
  0xba   :  { %647 = vmatmul.f32.vlgmr.msra.gmra.mxu2 %v1100_v52  ;;  %670 = vmatmul.f32.vlgmr.msra.gmra.mxu3 %v1102_v53  ;;  %v226_v45 = vld [vmem:[#allocation3 + $0x2d8] sm:$0xff] }
  0xbb   :  { %678 = vmatpush.msrb.mxu0 %v194_v8  ;;  %701 = vmatpush.msrb.mxu1 %v258_v9  ;;  %v290_v46 = vld [vmem:[#allocation3 + $0x4d8] sm:$0xff] }
  0xbc   :  { %724 = vmatpush.msrb.mxu2 %v322_v10  ;;  %747 = vmatpush.msrb.mxu3 %v386_v11  ;;  %v354_v47 = vld [vmem:[#allocation3 + $0x6d8] sm:$0xff] }
  0xbd   :  { %679 = vmatpush.msrb.mxu0 %v190_v16  ;;  %702 = vmatpush.msrb.mxu1 %v254_v17  ;;  %v158_v48 = vld [vmem:[#allocation3 + $0xb8] sm:$0xff] }
  0xbe   :  { %725 = vmatpush.msrb.mxu2 %v318_v18  ;;  %748 = vmatpush.msrb.mxu3 %v382_v19  ;;  %v222_v49 = vld [vmem:[#allocation3 + $0x2b8] sm:$0xff]  ;;  %v791_v18 = vld [vmem:[%s1358_s5 + $0x70] sm:$0xff]  ;;  %v790_v19 = vld [vmem:[%s1358_s5 + $0x68] sm:$0xff] }
  0xbf   :  { %680 = vmatpush.msrb.mxu0 %v186_v20  ;;  %703 = vmatpush.msrb.mxu1 %v250_v21  ;;  %v286_v54 = vld [vmem:[#allocation3 + $0x4b8] sm:$0xff]  ;;  %v782_v20 = vld [vmem:[%s1358_s5 + $0x28] sm:$0xff] }
  0xc0   :  { %726 = vmatpush.msrb.mxu2 %v314_v22  ;;  %749 = vmatpush.msrb.mxu3 %v378_v23  ;;  %v350_v55 = vld [vmem:[#allocation3 + $0x6b8] sm:$0xff]  ;;  %v806_v21 = vld [vmem:[%s1358_s5 + $0xe8] sm:$0xff] }
  0xc1   :  { %681 = vmatpush.msrb.mxu0 %v182_v24  ;;  %704 = vmatpush.msrb.mxu1 %v246_v25  ;;  %v154_v56 = vld [vmem:[#allocation3 + $0x98] sm:$0xff] }
  0xc2   :  { %727 = vmatpush.msrb.mxu2 %v310_v26  ;;  %750 = vmatpush.msrb.mxu3 %v374_v27  ;;  %v218_v57 = vld [vmem:[#allocation3 + $0x298] sm:$0xff]  ;;  %v779_v26 = vld [vmem:[%s1358_s5 + $0x10] sm:$0xff] }
  0xc3   :  { %604 = vmatmul.f32.gmra.mxu0 %v1108_v12  ;;  %627 = vmatmul.f32.gmra.mxu1 %v1110_v13  ;;  %v282_v58 = vld [vmem:[#allocation3 + $0x498] sm:$0xff]  ;;  %v803_v27 = vld [vmem:[%s1358_s5 + $0xd0] sm:$0xff] }
  0xc4   :  { %650 = vmatmul.f32.gmra.mxu2 %v1112_v14  ;;  %673 = vmatmul.f32.gmra.mxu3 %v1114_v15  ;;  %v346_v59 = vld [vmem:[#allocation3 + $0x698] sm:$0xff] }
  0xc5   :  { %682 = vmatpush.msrb.mxu0 %v178_v28  ;;  %705 = vmatpush.msrb.mxu1 %v242_v29  ;;  %v150_v60 = vld [vmem:[#allocation3 + $0x78] sm:$0xff]  ;;  %v778_v28 = vld [vmem:[%s1358_s5 + $0x8] sm:$0xff] }
  0xc6   :  { %728 = vmatpush.msrb.mxu2 %v306_v30  ;;  %751 = vmatpush.msrb.mxu3 %v370_v31  ;;  %v214_v61 = vld [vmem:[#allocation3 + $0x278] sm:$0xff]  ;;  %v802_v29 = vld [vmem:[%s1358_s5 + $0xc8] sm:$0xff] }
  0xc7   :  { %683 = vmatpush.msrb.mxu0 %v174_v32  ;;  %706 = vmatpush.msrb.mxu1 %v238_v33  ;;  %v278_v62 = vld [vmem:[#allocation3 + $0x478] sm:$0xff] }
  0xc8   :  { %729 = vmatpush.msrb.mxu2 %v302_v34  ;;  %752 = vmatpush.msrb.mxu3 %v366_v35  ;;  %v342_v63 = vld [vmem:[#allocation3 + $0x678] sm:$0xff]  ;;  %v799_v34 = vld [vmem:[%s1358_s5 + $0xb0] sm:$0xff] }
  0xc9   :  { %684 = vmatpush.msrb.mxu0 %v170_v36  ;;  %707 = vmatpush.msrb.mxu1 %v234_v37  ;;  %v146_v0 = vld [vmem:[#allocation3 + $0x58] sm:$0xff]  ;;  %v823_v35 = vld [vmem:[%s1358_s5 + $0x170] sm:$0xff]  ;;  %v798_v36 = vld [vmem:[%s1358_s5 + $0xa8] sm:$0xff] }
  0xca   :  { %730 = vmatpush.msrb.mxu2 %v298_v38  ;;  %753 = vmatpush.msrb.mxu3 %v362_v39  ;;  %v210_v1 = vld [vmem:[#allocation3 + $0x258] sm:$0xff]  ;;  %v822_v37 = vld [vmem:[%s1358_s5 + $0x168] sm:$0xff] }
  0xcb   :  { %685 = vmatpush.msrb.mxu0 %v166_v40  ;;  %708 = vmatpush.msrb.mxu1 %v230_v41  ;;  %v274_v2 = vld [vmem:[#allocation3 + $0x458] sm:$0xff] }
  0xcc   :  { %731 = vmatpush.msrb.mxu2 %v294_v42  ;;  %754 = vmatpush.msrb.mxu3 %v358_v43  ;;  %v338_v3 = vld [vmem:[#allocation3 + $0x658] sm:$0xff] }
  0xcd   :  { %686 = vmatpush.msrb.mxu0 %v162_v44  ;;  %709 = vmatpush.msrb.mxu1 %v226_v45  ;;  %v142_v4 = vld [vmem:[#allocation3 + $0x38] sm:$0xff]  ;;  %v795_v45 = vld [vmem:[%s1358_s5 + $0x90] sm:$0xff] }
  0xce   :  { %732 = vmatpush.msrb.mxu2 %v290_v46  ;;  %755 = vmatpush.msrb.mxu3 %v354_v47  ;;  %v206_v5 = vld [vmem:[#allocation3 + $0x238] sm:$0xff]  ;;  %v819_v46 = vld [vmem:[%s1358_s5 + $0x150] sm:$0xff] }
  0xcf   :  { %687 = vmatpush.msrb.mxu0 %v158_v48  ;;  %710 = vmatpush.msrb.mxu1 %v222_v49  ;;  %v270_v6 = vld [vmem:[#allocation3 + $0x438] sm:$0xff]  ;;  %v794_v48 = vld [vmem:[%s1358_s5 + $0x88] sm:$0xff] }
  0xd0   :  { %733 = vmatpush.msrb.mxu2 %v286_v54  ;;  %756 = vmatpush.msrb.mxu3 %v350_v55  ;;  %v334_v7 = vld [vmem:[#allocation3 + $0x638] sm:$0xff]  ;;  %v818_v49 = vld [vmem:[%s1358_s5 + $0x148] sm:$0xff] }
  0xd1   :  { %688 = vmatpush.msrb.mxu0 %v154_v56  ;;  %711 = vmatpush.msrb.mxu1 %v218_v57  ;;  %v138_v8 = vld [vmem:[#allocation3 + $0x18] sm:$0xff] }
  0xd2   :  { %734 = vmatpush.msrb.mxu2 %v282_v58  ;;  %757 = vmatpush.msrb.mxu3 %v346_v59  ;;  %v202_v9 = vld [vmem:[#allocation3 + $0x218] sm:$0xff] }
  0xd3   :  { %689 = vmatpush.msrb.mxu0 %v150_v60  ;;  %712 = vmatpush.msrb.mxu1 %v214_v61  ;;  %v266_v10 = vld [vmem:[#allocation3 + $0x418] sm:$0xff] }
  0xd4   :  { %735 = vmatpush.msrb.mxu2 %v278_v62  ;;  %758 = vmatpush.msrb.mxu3 %v342_v63  ;;  %v330_v11 = vld [vmem:[#allocation3 + $0x618] sm:$0xff] }
  0xd5   :  { %690 = vmatpush.msrb.mxu0 %v146_v0  ;;  %713 = vmatpush.msrb.mxu1 %v210_v1  ;;  %v792_v16 = vld [vmem:[%s1358_s5 + $0x78] sm:$0xff]  ;;  %v805_v22 = vld [vmem:[%s1358_s5 + $0xe0] sm:$0xff] }
  0xd6   :  { %736 = vmatpush.msrb.mxu2 %v274_v2  ;;  %759 = vmatpush.msrb.mxu3 %v338_v3  ;;  %v808_v17 = vld [vmem:[%s1358_s5 + $0xf8] sm:$0xff]  ;;  %v781_v23 = vld [vmem:[%s1358_s5 + $0x20] sm:$0xff]  ;;  %v815_v3 = vld [vmem:[%s1358_s5 + $0x130] sm:$0xff] }
  0xd7   :  { %691 = vmatpush.msrb.mxu0 %v142_v4  ;;  %714 = vmatpush.msrb.mxu1 %v206_v5  ;;  %v780_v24 = vld [vmem:[%s1358_s5 + $0x18] sm:$0xff]  ;;  %v777_v30 = vld [vmem:[%s1358_s5] sm:$0xff]  ;;  %v814_v4 = vld [vmem:[%s1358_s5 + $0x128] sm:$0xff] }
  0xd8   :  { %737 = vmatpush.msrb.mxu2 %v270_v6  ;;  %760 = vmatpush.msrb.mxu3 %v334_v7  ;;  %v804_v25 = vld [vmem:[%s1358_s5 + $0xd8] sm:$0xff]  ;;  %v801_v31 = vld [vmem:[%s1358_s5 + $0xc0] sm:$0xff] }
  0xd9   :  { %692 = vmatpush.msrb.mxu0 %v138_v8  ;;  %715 = vmatpush.msrb.mxu1 %v202_v9  ;;  %v800_v32 = vld [vmem:[%s1358_s5 + $0xb8] sm:$0xff]  ;;  %v797_v38 = vld [vmem:[%s1358_s5 + $0xa0] sm:$0xff] }
  0xda   :  { %738 = vmatpush.msrb.mxu2 %v266_v10  ;;  %761 = vmatpush.msrb.mxu3 %v330_v11  ;;  %v824_v33 = vld [vmem:[%s1358_s5 + $0x178] sm:$0xff]  ;;  %v821_v39 = vld [vmem:[%s1358_s5 + $0x160] sm:$0xff] }
  0xdb   :  { %693 = vmatmul.f32.vlgmr.msrb.gmra.mxu0 %v1096_v50  ;;  %716 = vmatmul.f32.vlgmr.msrb.gmra.mxu1 %v1098_v51  ;;  %v789_v50 = vld [vmem:[%s1358_s5 + $0x60] sm:$0xff]  ;;  %v788_v51 = vld [vmem:[%s1358_s5 + $0x58] sm:$0xff] }
  0xdc   :  { %739 = vmatmul.f32.vlgmr.msrb.gmra.mxu2 %v1100_v52  ;;  %762 = vmatmul.f32.vlgmr.msrb.gmra.mxu3 %v1102_v53  ;;  %v787_v52 = vld [vmem:[%s1358_s5 + $0x50] sm:$0xff]  ;;  %v786_v53 = vld [vmem:[%s1358_s5 + $0x48] sm:$0xff]  ;;  %v1243_v40 = vld [vmem:[%s1357_s4] sm:$0xf] }
  0xdd   :  { %845 = vmatpush.msra.mxu0 %v792_v16  ;;  %868 = vmatpush.msra.mxu1 %v808_v17  ;;  %v393_v41 = vperm.slane %v1243_v40, 0  ;;  %v796_v43 = vld [vmem:[%s1358_s5 + $0x98] sm:$0xff]  ;;  %v793_v55 = vld [vmem:[%s1358_s5 + $0x80] sm:$0xff]  ;;  %v394_v9 = vperm.slane %v1243_v40, 1 }
  0xde   :  { %891 = vmatpush.msra.mxu2 %v824_v33  ;;  %v820_v44 = vld [vmem:[%s1358_s5 + $0x158] sm:$0xff]  ;;  %v817_v56 = vld [vmem:[%s1358_s5 + $0x140] sm:$0xff] }
  0xdf   :  { %846 = vmatpush.msra.mxu0 %v791_v18  ;;  %v816_v63 = vld [vmem:[%s1358_s5 + $0x138] sm:$0xff]  ;;  %v813_v6 = vld [vmem:[%s1358_s5 + $0x120] sm:$0xff] }
  0xe0   :  { %892 = vmatpush.msra.mxu2 %v823_v35  ;;  %v812_v17 = vld [vmem:[%s1358_s5 + $0x118] sm:$0xff]  ;;  %v833_v35 = vld [vmem:[%s1358_s5 + $0x1c0] sm:$0xff] }
  0xe1   :  { %847 = vmatpush.msra.mxu0 %v790_v19 }
  0xe2   :  { %893 = vmatpush.msra.mxu2 %v822_v37 }
  0xe3   :  { %696 = vmatmul.f32.gmra.mxu0 %v1108_v12  ;;  %719 = vmatmul.f32.gmra.mxu1 %v1110_v13  ;;  %v785_v12 = vld [vmem:[%s1358_s5 + $0x40] sm:$0xff]  ;;  %v784_v13 = vld [vmem:[%s1358_s5 + $0x38] sm:$0xff] }
  0xe4   :  { %742 = vmatmul.f32.gmra.mxu2 %v1112_v14  ;;  %765 = vmatmul.f32.gmra.mxu3 %v1114_v15  ;;  %v783_v14 = vld [vmem:[%s1358_s5 + $0x30] sm:$0xff] }
  0xe5   :  { %848 = vmatpush.msra.mxu0 %v789_v50  ;;  %v807_v15 = vld [vmem:[%s1358_s5 + $0xf0] sm:$0xff]  ;;  %894 = vmatpush.msra.mxu2 %v821_v39  ;;  %v832_v39 = vld [vmem:[%s1358_s5 + $0x1b8] sm:$0xff] }
  0xe6   :  { %869 = vmatpush.msra.mxu1 %v807_v15  ;;  %v811_v50 = vld [vmem:[%s1358_s5 + $0x110] sm:$0xff] }
  0xe7   :  { %849 = vmatpush.msra.mxu0 %v788_v51  ;;  %895 = vmatpush.msra.mxu2 %v820_v44  ;;  %v810_v51 = vld [vmem:[%s1358_s5 + $0x108] sm:$0xff]  ;;  %v831_v44 = vld [vmem:[%s1358_s5 + $0x1b0] sm:$0xff] }
  0xe8   :  { %870 = vmatpush.msra.mxu1 %v806_v21 }
  0xe9   :  { %850 = vmatpush.msra.mxu0 %v787_v52  ;;  %896 = vmatpush.msra.mxu2 %v819_v46  ;;  %v840_v52 = vld [vmem:[%s1358_s5 + $0x1f8] sm:$0xff] }
  0xea   :  { %871 = vmatpush.msra.mxu1 %v805_v22  ;;  %914 = vmatpush.msra.mxu3 %v840_v52 }
  0xeb   :  { %851 = vmatpush.msra.mxu0 %v786_v53  ;;  %897 = vmatpush.msra.mxu2 %v818_v49  ;;  %v809_v53 = vld [vmem:[%s1358_s5 + $0x100] sm:$0xff] }
  0xec   :  { %872 = vmatpush.msra.mxu1 %v804_v25 }
  0xed   :  { %852 = vmatpush.msra.mxu0 %v785_v12  ;;  %898 = vmatpush.msra.mxu2 %v817_v56 }
  0xee   :  { %873 = vmatpush.msra.mxu1 %v803_v27  ;;  %v837_v27 = vld [vmem:[%s1358_s5 + $0x1e0] sm:$0xff] }
  0xef   :  { %853 = vmatpush.msra.mxu0 %v784_v13  ;;  %899 = vmatpush.msra.mxu2 %v816_v63  ;;  %v825_v63 = vld [vmem:[%s1358_s5 + $0x180] sm:$0xff] }
  0xf0   :  { %874 = vmatpush.msra.mxu1 %v802_v29  ;;  %v835_v29 = vld [vmem:[%s1358_s5 + $0x1d0] sm:$0xff] }
  0xf1   :  { %854 = vmatpush.msra.mxu0 %v783_v14  ;;  %900 = vmatpush.msra.mxu2 %v815_v3 }
  0xf2   :  { %875 = vmatpush.msra.mxu1 %v801_v31 }
  0xf3   :  { %855 = vmatpush.msra.mxu0 %v782_v20  ;;  %901 = vmatpush.msra.mxu2 %v814_v4  ;;  %v839_v20 = vld [vmem:[%s1358_s5 + $0x1f0] sm:$0xff] }
  0xf4   :  { %876 = vmatpush.msra.mxu1 %v800_v32  ;;  %915 = vmatpush.msra.mxu3 %v839_v20  ;;  %v834_v32 = vld [vmem:[%s1358_s5 + $0x1c8] sm:$0xff] }
  0xf5   :  { %856 = vmatpush.msra.mxu0 %v781_v23  ;;  %902 = vmatpush.msra.mxu2 %v813_v6 }
  0xf6   :  { %877 = vmatpush.msra.mxu1 %v799_v34 }
  0xf7   :  { %857 = vmatpush.msra.mxu0 %v780_v24  ;;  %903 = vmatpush.msra.mxu2 %v812_v17  ;;  %v838_v24 = vld [vmem:[%s1358_s5 + $0x1e8] sm:$0xff] }
  0xf8   :  { %878 = vmatpush.msra.mxu1 %v798_v36  ;;  %916 = vmatpush.msra.mxu3 %v838_v24 }
  0xf9   :  { %858 = vmatpush.msra.mxu0 %v779_v26  ;;  %904 = vmatpush.msra.mxu2 %v811_v50 }
  0xfa   :  { %879 = vmatpush.msra.mxu1 %v797_v38  ;;  %917 = vmatpush.msra.mxu3 %v837_v27  ;;  %v395_v38 = vperm.slane %v1243_v40, 2 }
  0xfb   :  { %859 = vmatpush.msra.mxu0 %v778_v28  ;;  %905 = vmatpush.msra.mxu2 %v810_v51  ;;  %v836_v28 = vld [vmem:[%s1358_s5 + $0x1d8] sm:$0xff] }
  0xfc   :  { %880 = vmatpush.msra.mxu1 %v796_v43  ;;  %918 = vmatpush.msra.mxu3 %v836_v28 }
  0xfd   :  { %860 = vmatpush.msra.mxu0 %v777_v30  ;;  %906 = vmatpush.msra.mxu2 %v809_v53 }
  0xfe   :  { %881 = vmatpush.msra.mxu1 %v795_v45  ;;  %919 = vmatpush.msra.mxu3 %v835_v29  ;;  %v830_v45 = vld [vmem:[%s1358_s5 + $0x1a8] sm:$0xff] }
 0x100   :  { %882 = vmatpush.msra.mxu1 %v794_v48  ;;  %920 = vmatpush.msra.mxu3 %v834_v32 }
 0x102   :  { %883 = vmatpush.msra.mxu1 %v793_v55  ;;  %921 = vmatpush.msra.mxu3 %v833_v35  ;;  %v828_v55 = vld [vmem:[%s1358_s5 + $0x198] sm:$0xff] }
 0x104   :  { %922 = vmatpush.msra.mxu3 %v832_v39 }
 0x106   :  { %923 = vmatpush.msra.mxu3 %v831_v44 }
 0x108   :  { %924 = vmatpush.msra.mxu3 %v830_v45 }
 0x10c   :  { %v418_v42 = vpop.f32.mrf.mxu0  ;;  %v441_v54 = vpop.f32.mrf.mxu1 }
 0x10d   :  { %v419_v47 = vadd.f32 %v418_v42, %v393_v41 }
 0x10f   :  { %v442_v57 = vadd.f32 %v441_v54, %v419_v47  ;;  %v829_v47 = vld [vmem:[%s1358_s5 + $0x1a0] sm:$0xff] }
 0x110   :  { %925 = vmatpush.msra.mxu3 %v829_v47 }
 0x112   :  { %926 = vmatpush.msra.mxu3 %v828_v55 }
 0x113   :  { %v464_v58 = vpop.f32.mrf.mxu2  ;;  %v487_v60 = vpop.f32.mrf.mxu3 }
 0x114   :  { %v465_v59 = vadd.f32 %v464_v58, %v442_v57 }
 0x116   :  { %v488_v61 = vadd.f32 %v487_v60, %v465_v59  ;;  %v421_v62 = vpop.f32.mrf.mxu0  ;;  %v444_v2 = vpop.f32.mrf.mxu1  ;;  %v827_v59 = vld [vmem:[%s1358_s5 + $0x190] sm:$0xff] }
 0x117   :  { %v422_v0 = vadd.f32 %v421_v62, %v393_v41  ;;  %927 = vmatpush.msra.mxu3 %v827_v59  ;;  %v826_v62 = vld [vmem:[%s1358_s5 + $0x188] sm:$0xff] }
 0x118   :  { %v769_v1 = vmax.f32 %v488_v61, 0.0 }
 0x119   :  { %v445_v5 = vadd.f32 %v444_v2, %v422_v0  ;;  %928 = vmatpush.msra.mxu3 %v826_v62 }
 0x11a   :  { %861 = vmatmul.f32.vlgmr.msra.gmra.mxu0 %v769_v1 }
 0x11b   :  { %929 = vmatpush.msra.mxu3 %v825_v63 }
 0x11d   :  { %v467_v7 = vpop.f32.mrf.mxu2  ;;  %v490_v10 = vpop.f32.mrf.mxu3 }
 0x11e   :  { %v468_v8 = vadd.f32 %v467_v7, %v445_v5  ;;  %v396_v7 = vperm.slane %v1243_v40, 3 }
 0x120   :  { %v491_v11 = vadd.f32 %v490_v10, %v468_v8  ;;  %v510_v16 = vpop.f32.mrf.mxu0  ;;  %v533_v12 = vpop.f32.mrf.mxu1 }
 0x121   :  { %v511_v19 = vadd.f32 %v510_v16, %v394_v9 }
 0x122   :  { %v773_v18 = vmax.f32 %v491_v11, 0.0 }
 0x123   :  { %v534_v13 = vadd.f32 %v533_v12, %v511_v19 }
 0x124   :  { %864 = vmatmul.f32.gmra.mxu0 %v773_v18 }
 0x127   :  { %v556_v14 = vpop.f32.mrf.mxu2  ;;  %v579_v21 = vpop.f32.mrf.mxu3 }
 0x128   :  { %v557_v15 = vadd.f32 %v556_v14, %v534_v13 }
 0x12a   :  { %v580_v22 = vadd.f32 %v579_v21, %v557_v15  ;;  %v513_v23 = vpop.f32.mrf.mxu0  ;;  %v536_v30 = vpop.f32.mrf.mxu1 }
 0x12b   :  { %v514_v26 = vadd.f32 %v513_v23, %v394_v9 }
 0x12c   :  { %v770_v25 = vmax.f32 %v580_v22, 0.0  ;;  %v995_v22 = vld [vmem:[#allocation2] ss:$0 sm:$0xff] }
 0x12d   :  { %v537_v31 = vadd.f32 %v536_v30, %v514_v26 }
 0x12e   :  { %884 = vmatmul.f32.vlgmr.msra.gmra.mxu1 %v770_v25 }
 0x131   :  { %v559_v33 = vpop.f32.mrf.mxu2  ;;  %v582_v36 = vpop.f32.mrf.mxu3 }
 0x132   :  { %v560_v34 = vadd.f32 %v559_v33, %v537_v31 }
 0x133   :  { %v602_v42 = vpop.f32.mrf.mxu0 }
 0x134   :  { %v583_v37 = vadd.f32 %v582_v36, %v560_v34  ;;  %v603_v43 = vadd.f32 %v602_v42, %v395_v38 }
 0x136   :  { %v774_v41 = vmax.f32 %v583_v37, 0.0  ;;  %v625_v46 = vpop.f32.mrf.mxu1 }
 0x137   :  { %v626_v48 = vadd.f32 %v625_v46, %v603_v43 }
 0x138   :  { %887 = vmatmul.f32.gmra.mxu1 %v774_v41 }
 0x13d   :  { %v648_v49 = vpop.f32.mrf.mxu2  ;;  %v671_v56 = vpop.f32.mrf.mxu3 }
 0x13e   :  { %v649_v54 = vadd.f32 %v648_v49, %v626_v48 }
 0x140   :  { %v672_v57 = vadd.f32 %v671_v56, %v649_v54  ;;  %v605_v58 = vpop.f32.mrf.mxu0  ;;  %v628_v0 = vpop.f32.mrf.mxu1 }
 0x141   :  { %v606_v61 = vadd.f32 %v605_v58, %v395_v38 }
 0x142   :  { %v771_v60 = vmax.f32 %v672_v57, 0.0 }
 0x143   :  { %v629_v1 = vadd.f32 %v628_v0, %v606_v61 }
 0x144   :  { %907 = vmatmul.f32.vlgmr.msra.gmra.mxu2 %v771_v60 }
 0x147   :  { %v651_v2 = vpop.f32.mrf.mxu2  ;;  %v674_v4 = vpop.f32.mrf.mxu3 }
 0x148   :  { %v652_v3 = vadd.f32 %v651_v2, %v629_v1 }
 0x14a   :  { %v675_v5 = vadd.f32 %v674_v4, %v652_v3 }
 0x14c   :  { %v775_v6 = vmax.f32 %v675_v5, 0.0 }
 0x14e   :  { %910 = vmatmul.f32.gmra.mxu2 %v775_v6 }
 0x158   :  { %v694_v8 = vpop.f32.mrf.mxu0  ;;  %v717_v10 = vpop.f32.mrf.mxu1 }
 0x159   :  { %v695_v9 = vadd.f32 %v694_v8, %v396_v7 }
 0x15b   :  { %v718_v11 = vadd.f32 %v717_v10, %v695_v9 }
 0x15f   :  { %v740_v16 = vpop.f32.mrf.mxu2  ;;  %v763_v17 = vpop.f32.mrf.mxu3 }
 0x160   :  { %v741_v18 = vadd.f32 %v740_v16, %v718_v11  ;;  %v697_v19 = vpop.f32.mrf.mxu0  ;;  %v720_v53 = vpop.f32.mrf.mxu1 }
 0x161   :  { %v698_v51 = vadd.f32 %v697_v19, %v396_v7 }
 0x162   :  { %v764_v50 = vadd.f32 %v763_v17, %v741_v18 }
 0x163   :  { %v721_v12 = vadd.f32 %v720_v53, %v698_v51 }
 0x164   :  { %v772_v52 = vmax.f32 %v764_v50, 0.0 }
 0x166   :  { %930 = vmatmul.f32.vlgmr.msra.gmra.mxu3 %v772_v52 }
 0x167   :  { %v743_v13 = vpop.f32.mrf.mxu2  ;;  %v766_v15 = vpop.f32.mrf.mxu3 }
 0x168   :  { %v744_v14 = vadd.f32 %v743_v13, %v721_v12 }
 0x16a   :  { %v767_v20 = vadd.f32 %v766_v15, %v744_v14 }
 0x16c   :  { %v776_v21 = vmax.f32 %v767_v20, 0.0 }
 0x16e   :  { %933 = vmatmul.f32.gmra.mxu3 %v776_v21 }
 0x197   :  { %v862_v40 = vpop.f32.mrf.mxu0 }
 0x198   :  { %v863_v25 = vadd.f32 %v995_v22, %v862_v40 }
 0x1a1   :  { %v865_v28 = vpop.f32.mrf.mxu0 }
 0x1a2   :  { %v866_v32 = vadd.f32 %v995_v22, %v865_v28 }
 0x1ab   :  { %v885_v23 = vpop.f32.mrf.mxu1 }
 0x1ac   :  { %v886_v26 = vadd.f32 %v885_v23, %v863_v25 }
 0x1b5   :  { %v888_v31 = vpop.f32.mrf.mxu1 }
 0x1b6   :  { %v889_v35 = vadd.f32 %v888_v31, %v866_v32 }
 0x1c7   :  { %v908_v24 = vpop.f32.mrf.mxu2 }
 0x1c8   :  { %v909_v27 = vadd.f32 %v908_v24, %v886_v26 }
 0x1d1   :  { %v911_v34 = vpop.f32.mrf.mxu2 }
 0x1d2   :  { %v912_v36 = vadd.f32 %v911_v34, %v889_v35 }
 0x1e9   :  { %v931_v29 = vpop.f32.mrf.mxu3 }
 0x1ea   :  { %v932_v30 = vadd.f32 %v931_v29, %v909_v27 }
 0x1ec   :  { %v984_v33 = vmul.f32 -1.442695, %v932_v30 }
 0x1ee   :  { %996 = vpow2.f32 %v984_v33 }
 0x1f1   :  { %v934_v37 = vpop.f32.mrf.mxu3 }
 0x1f2   :  { %v935_v38 = vadd.f32 %v934_v37, %v912_v36 }
 0x1f4   :  { %v997_v39 = vpop.eup %996  ;;  %v985_v41 = vmul.f32 -1.442695, %v935_v38 }
 0x1f5   :  { %v943_v42 = vadd.f32 1.0, %v997_v39 }
 0x1f6   :  { %998 = vpow2.f32 %v985_v41 }
 0x1f7   :  { %1000 = vrcp.f32 %v943_v42  ;;  %v956_v48 = vand.u32 2147483648, %v943_v42  ;;  %v954_v54 = vand.u32 2147483647, %v943_v42  ;;  %vm950_vm1 = vweird.f32 %v943_v42 }
 0x1f9   :  { %v957_v57 = vor.u32 1.1754944e-38, %v956_v48  ;;  %vm955_vm4 = vcmp.eq.f32.partialorder %v954_v54, 8.507059e+37 }
 0x1fc   :  { %v999_v43 = vpop.eup %998 }
 0x1fd   :  { %v1001_v44 = vpop.eup %1000  ;;  %v944_v45 = vadd.f32 1.0, %v999_v43 }
 0x1fe   :  { %v946_v46 = vmul.f32 %v1001_v44, %v943_v42  ;;  %vm951_vm0 = vweird.f32 %v1001_v44 }
 0x1ff   :  { %1002 = vrcp.f32 %v944_v45  ;;  %vm952_vm2 = vmor %vm950_vm1, %vm951_vm0  ;;  %v971_v62 = vand.u32 2147483648, %v944_v45  ;;  %v969_v0 = vand.u32 2147483647, %v944_v45  ;;  %vm965_vm6 = vweird.f32 %v944_v45 }
 0x200   :  { %v947_v47 = vsub.f32 1.0, %v946_v46 }
 0x201   :  { %v972_v2 = vor.u32 1.1754944e-38, %v971_v62  ;;  %vm970_vm8 = vcmp.eq.f32.partialorder %v969_v0, 8.507059e+37 }
 0x202   :  { %v948_v49 = vmul.f32 %v1001_v44, %v947_v47 }
 0x204   :  { %v949_v55 = vadd.f32 %v1001_v44, %v948_v49 }
 0x205   :  { %v1003_v56 = vpop.eup %1002 }
 0x206   :  { %v953_v58 = vsel %vm952_vm2, %v1001_v44, %v949_v55  ;;  %v961_v59 = vmul.f32 %v1003_v56, %v944_v45  ;;  %vm966_vm5 = vweird.f32 %v1003_v56 }
 0x207   :  { %v958_v60 = vsel %vm955_vm4, %v957_v57, %v953_v58  ;;  %vm967_vm7 = vmor %vm965_vm6, %vm966_vm5 }
 0x208   :  { %976 = vst.msk [vmem:[%s1360_s7] sm:$0xff] %vm975_vm3, %v958_v60  ;;  %v962_v61 = vsub.f32 1.0, %v961_v59 }
 0x20a   :  { %v963_v63 = vmul.f32 %v1003_v56, %v962_v61 }
 0x20c   :  { %v964_v1 = vadd.f32 %v1003_v56, %v963_v63 }
 0x20e   :  { %v968_v3 = vsel %vm967_vm7, %v1003_v56, %v964_v1 }
 0x20f   :  { %v973_v4 = vsel %vm970_vm8, %v972_v2, %v968_v3 }
 0x210   :  { %977 = vst.msk [vmem:[%s1360_s7 + $0x8] sm:$0xff] %vm975_vm3, %v973_v4 }
 0x211   :  { %982 = vsyncpa [#allocation4], 1 }

</bundles_post_ra>
